<compile_context>
chip_gen: v5e
topology: v5e:2x2
jax: 0.10.0
libtpu: 0.0.40
codegen_flags: <defaults>
</compile_context>

<pallas_src>
import jax
import jax.numpy as jnp
from jax.experimental import pallas as pl
from jax.experimental.pallas import tpu as pltpu


def mlp_kernel(w1_ref, b1_ref, w2_ref, b2_ref, w3_ref, b3_ref, x_ref, o_ref):
    # x_ref: (3, R, 128) -- feature planes of densely packed batch elements.
    x0 = x_ref[0]   # (R, 128)
    x1 = x_ref[1]
    x2 = x_ref[2]

    # fc1: 3 -> 2, ReLU.  Scalar-broadcast FMAs on the VPU (no MXU).
    h1_0 = jnp.maximum(
        x0 * w1_ref[0, 0] + x1 * w1_ref[1, 0] + x2 * w1_ref[2, 0] + b1_ref[0], 0.0)
    h1_1 = jnp.maximum(
        x0 * w1_ref[0, 1] + x1 * w1_ref[1, 1] + x2 * w1_ref[2, 1] + b1_ref[1], 0.0)

    # fc2: 2 -> 2, ReLU.
    h2_0 = jnp.maximum(h1_0 * w2_ref[0, 0] + h1_1 * w2_ref[1, 0] + b2_ref[0], 0.0)
    h2_1 = jnp.maximum(h1_0 * w2_ref[0, 1] + h1_1 * w2_ref[1, 1] + b2_ref[1], 0.0)

    # fc3: 2 -> 1 (no activation).  One dense (R, 128) store.
    o_ref[...] = (h2_0 * w3_ref[0, 0] + h2_1 * w3_ref[1, 0] + b3_ref[0]).astype(o_ref.dtype)


def _choose_tiling(batch, max_rows):
    """Rows are groups of 128 batch elements.  Returns (rows_per_tile, num_tiles)."""
    r_needed = (batch + 127) // 128
    if r_needed <= max_rows:
        # Single tile: block == full array, so no multiple-of-8 constraint on the row dim.
        return r_needed, 1
    # Balance tiles so tail padding stays small, keep the block row dim a multiple of 8.
    num_tiles = (r_needed + max_rows - 1) // max_rows
    r_tile = (r_needed + num_tiles - 1) // num_tiles
    r_tile = ((r_tile + 7) // 8) * 8
    num_tiles = (r_needed + r_tile - 1) // r_tile
    return r_tile, num_tiles


def mlp_forward(x, params, *, max_rows_per_tile=2048):
    """x: (B, 3) float32.  Returns (B, 1), matching PyTorch MLP.forward."""
    w1, b1, w2, b2, w3, b3 = params
    B = x.shape[0]

    r_tile, num_tiles = _choose_tiling(B, max_rows_per_tile)
    r_total = r_tile * num_tiles
    b_pad = r_total * 128

    # Feature-major, lane-dense layout: batch element b -> (row b // 128, lane b % 128).
    # (One extra HBM pass; see NOTE at top -- producers can emit this layout directly.)
    x_t = jnp.zeros((3, b_pad), x.dtype).at[:, :B].set(x.T).reshape(3, r_total, 128)

    smem = pl.BlockSpec(memory_space=pltpu.MemorySpace.SMEM)
    flops = 2 * b_pad * (3 * 2 + 2 * 2 + 2 * 1)
    param_bytes = 4 * (3 * 2 + 2 + 2 * 2 + 2 + 2 * 1 + 1)
    bytes_accessed = 4 * (3 * b_pad + b_pad) + param_bytes  # padded in + out + params

    out = pl.pallas_call(
        mlp_kernel,
        out_shape=jax.ShapeDtypeStruct((r_total, 128), x.dtype),
        grid=(num_tiles,),
        in_specs=[
            smem, smem, smem, smem, smem, smem,                  # params resident in SMEM
            pl.BlockSpec((3, r_tile, 128), lambda i: (0, i, 0)),  # activations, pipelined
        ],
        out_specs=pl.BlockSpec((r_tile, 128), lambda i: (i, 0)),  # lane-dense output slab
        compiler_params=pltpu.CompilerParams(
            dimension_semantics=("parallel",)),
        cost_estimate=pl.CostEstimate(
            flops=flops, transcendentals=0, bytes_accessed=bytes_accessed),
    )(w1, b1, w2, b2, w3, b3, x_t)

    # Back to the PyTorch layout: (B, 1).  Padded tail columns are dropped here.
    return out.reshape(b_pad)[:B].reshape(B, 1)


def init_params(key):
    # Deterministic init mirroring PyTorch nn.Linear default:
    # U(-1/sqrt(fan_in), +1/sqrt(fan_in)).  Weights stored as [in, out].
    def linear(key, fan_in, fan_out):
        kw, kb = jax.random.split(key)
        bound = 1.0 / jnp.sqrt(float(fan_in))
        w = jax.random.uniform(kw, (fan_in, fan_out), jnp.float32, -bound, bound)
        b = jax.random.uniform(kb, (fan_out,), jnp.float32, -bound, bound)
        return w, b

    k1, k2, k3 = jax.random.split(key, 3)
    w1, b1 = linear(k1, 3, 2)
    w2, b2 = linear(k2, 2, 2)
    w3, b3 = linear(k3, 2, 1)
    return (w1, b1, w2, b2, w3, b3)


def reference_forward(x, params):
    # Pure-JAX reference for correctness check.
    w1, b1, w2, b2, w3, b3 = params
    h1 = jnp.maximum(x @ w1 + b1, 0.0)
    h2 = jnp.maximum(h1 @ w2 + b2, 0.0)
    return h2 @ w3 + b3


if __name__ == "__main__":
    key = jax.random.PRNGKey(0)
    kx, kp = jax.random.split(key)
    batch = 8
    x = jax.random.normal(kx, (batch, 3), jnp.float32)
    params = init_params(kp)

    out = mlp_forward(x, params)
    out = jax.block_until_ready(out)

    ref = reference_forward(x, params)
    assert out.shape == (batch, 1), out.shape
    assert jnp.allclose(out, ref, atol=1e-5, rtol=1e-5)

    print("KERNEL_OK")
</pallas_src>

<mosaic_0001>
module attributes {stable_mosaic.version = 11 : i64} {
  func.func @mlp_kernel(%arg0: i32, %arg1: memref<3x2xf32, #tpu.memory_space<smem>>, %arg2: memref<2xf32, #tpu.memory_space<smem>>, %arg3: memref<2x2xf32, #tpu.memory_space<smem>>, %arg4: memref<2xf32, #tpu.memory_space<smem>>, %arg5: memref<2x1xf32, #tpu.memory_space<smem>>, %arg6: memref<1xf32, #tpu.memory_space<smem>>, %arg7: memref<3x1x128xf32, #tpu.memory_space<vmem>>, %arg8: memref<1x128xf32, #tpu.memory_space<vmem>>) attributes {dimension_semantics = [#tpu.dimension_semantics<parallel>], iteration_bounds = array<i64: 1>, scalar_prefetch = 0 : i64, scratch_operands = 0 : i64, tpu.core_type = #tpu.core_type<tc>, window_params = [{transform_indices = @transform_0, window_bounds = array<i64: 3, 2>}, {transform_indices = @transform_1, window_bounds = array<i64: 2>}, {transform_indices = @transform_2, window_bounds = array<i64: 2, 2>}, {transform_indices = @transform_3, window_bounds = array<i64: 2>}, {transform_indices = @transform_4, window_bounds = array<i64: 2, 1>}, {transform_indices = @transform_5, window_bounds = array<i64: 1>}, {transform_indices = @transform_6, window_bounds = array<i64: 3, 1, 128>}, {transform_indices = @transform_7, window_bounds = array<i64: 1, 128>}]} {
    %c0 = arith.constant 0 : index
    %c0_0 = arith.constant 0 : index
    %c0_1 = arith.constant 0 : index
    %0 = vector.load %arg7[%c0, %c0_0, %c0_1] : memref<3x1x128xf32, #tpu.memory_space<vmem>>, vector<1x1x128xf32>
    %1 = vector.shape_cast %0 : vector<1x1x128xf32> to vector<1x128xf32>
    %c1 = arith.constant 1 : index
    %c0_2 = arith.constant 0 : index
    %c0_3 = arith.constant 0 : index
    %2 = vector.load %arg7[%c1, %c0_2, %c0_3] : memref<3x1x128xf32, #tpu.memory_space<vmem>>, vector<1x1x128xf32>
    %3 = vector.shape_cast %2 : vector<1x1x128xf32> to vector<1x128xf32>
    %c2 = arith.constant 2 : index
    %c0_4 = arith.constant 0 : index
    %c0_5 = arith.constant 0 : index
    %4 = vector.load %arg7[%c2, %c0_4, %c0_5] : memref<3x1x128xf32, #tpu.memory_space<vmem>>, vector<1x1x128xf32>
    %5 = vector.shape_cast %4 : vector<1x1x128xf32> to vector<1x128xf32>
    %c0_6 = arith.constant 0 : index
    %c0_7 = arith.constant 0 : index
    %6 = memref.load %arg1[%c0_6, %c0_7] : memref<3x2xf32, #tpu.memory_space<smem>>
    %7 = vector.broadcast %6 : f32 to vector<1x128xf32>
    %8 = arith.mulf %1, %7 : vector<1x128xf32>
    %c1_8 = arith.constant 1 : index
    %c0_9 = arith.constant 0 : index
    %9 = memref.load %arg1[%c1_8, %c0_9] : memref<3x2xf32, #tpu.memory_space<smem>>
    %10 = vector.broadcast %9 : f32 to vector<1x128xf32>
    %11 = arith.mulf %3, %10 : vector<1x128xf32>
    %12 = arith.addf %8, %11 : vector<1x128xf32>
    %c2_10 = arith.constant 2 : index
    %c0_11 = arith.constant 0 : index
    %13 = memref.load %arg1[%c2_10, %c0_11] : memref<3x2xf32, #tpu.memory_space<smem>>
    %14 = vector.broadcast %13 : f32 to vector<1x128xf32>
    %15 = arith.mulf %5, %14 : vector<1x128xf32>
    %16 = arith.addf %12, %15 : vector<1x128xf32>
    %c0_12 = arith.constant 0 : index
    %17 = memref.load %arg2[%c0_12] : memref<2xf32, #tpu.memory_space<smem>>
    %18 = vector.broadcast %17 : f32 to vector<1x128xf32>
    %19 = arith.addf %16, %18 : vector<1x128xf32>
    %cst = arith.constant 0.000000e+00 : f32
    %20 = vector.broadcast %cst : f32 to vector<1x128xf32>
    %21 = arith.maximumf %19, %20 : vector<1x128xf32>
    %c0_13 = arith.constant 0 : index
    %c1_14 = arith.constant 1 : index
    %22 = memref.load %arg1[%c0_13, %c1_14] : memref<3x2xf32, #tpu.memory_space<smem>>
    %23 = vector.broadcast %22 : f32 to vector<1x128xf32>
    %24 = arith.mulf %1, %23 : vector<1x128xf32>
    %c1_15 = arith.constant 1 : index
    %c1_16 = arith.constant 1 : index
    %25 = memref.load %arg1[%c1_15, %c1_16] : memref<3x2xf32, #tpu.memory_space<smem>>
    %26 = vector.broadcast %25 : f32 to vector<1x128xf32>
    %27 = arith.mulf %3, %26 : vector<1x128xf32>
    %28 = arith.addf %24, %27 : vector<1x128xf32>
    %c2_17 = arith.constant 2 : index
    %c1_18 = arith.constant 1 : index
    %29 = memref.load %arg1[%c2_17, %c1_18] : memref<3x2xf32, #tpu.memory_space<smem>>
    %30 = vector.broadcast %29 : f32 to vector<1x128xf32>
    %31 = arith.mulf %5, %30 : vector<1x128xf32>
    %32 = arith.addf %28, %31 : vector<1x128xf32>
    %c1_19 = arith.constant 1 : index
    %33 = memref.load %arg2[%c1_19] : memref<2xf32, #tpu.memory_space<smem>>
    %34 = vector.broadcast %33 : f32 to vector<1x128xf32>
    %35 = arith.addf %32, %34 : vector<1x128xf32>
    %cst_20 = arith.constant 0.000000e+00 : f32
    %36 = vector.broadcast %cst_20 : f32 to vector<1x128xf32>
    %37 = arith.maximumf %35, %36 : vector<1x128xf32>
    %c0_21 = arith.constant 0 : index
    %c0_22 = arith.constant 0 : index
    %38 = memref.load %arg3[%c0_21, %c0_22] : memref<2x2xf32, #tpu.memory_space<smem>>
    %39 = vector.broadcast %38 : f32 to vector<1x128xf32>
    %40 = arith.mulf %21, %39 : vector<1x128xf32>
    %c1_23 = arith.constant 1 : index
    %c0_24 = arith.constant 0 : index
    %41 = memref.load %arg3[%c1_23, %c0_24] : memref<2x2xf32, #tpu.memory_space<smem>>
    %42 = vector.broadcast %41 : f32 to vector<1x128xf32>
    %43 = arith.mulf %37, %42 : vector<1x128xf32>
    %44 = arith.addf %40, %43 : vector<1x128xf32>
    %c0_25 = arith.constant 0 : index
    %45 = memref.load %arg4[%c0_25] : memref<2xf32, #tpu.memory_space<smem>>
    %46 = vector.broadcast %45 : f32 to vector<1x128xf32>
    %47 = arith.addf %44, %46 : vector<1x128xf32>
    %cst_26 = arith.constant 0.000000e+00 : f32
    %48 = vector.broadcast %cst_26 : f32 to vector<1x128xf32>
    %49 = arith.maximumf %47, %48 : vector<1x128xf32>
    %c0_27 = arith.constant 0 : index
    %c1_28 = arith.constant 1 : index
    %50 = memref.load %arg3[%c0_27, %c1_28] : memref<2x2xf32, #tpu.memory_space<smem>>
    %51 = vector.broadcast %50 : f32 to vector<1x128xf32>
    %52 = arith.mulf %21, %51 : vector<1x128xf32>
    %c1_29 = arith.constant 1 : index
    %c1_30 = arith.constant 1 : index
    %53 = memref.load %arg3[%c1_29, %c1_30] : memref<2x2xf32, #tpu.memory_space<smem>>
    %54 = vector.broadcast %53 : f32 to vector<1x128xf32>
    %55 = arith.mulf %37, %54 : vector<1x128xf32>
    %56 = arith.addf %52, %55 : vector<1x128xf32>
    %c1_31 = arith.constant 1 : index
    %57 = memref.load %arg4[%c1_31] : memref<2xf32, #tpu.memory_space<smem>>
    %58 = vector.broadcast %57 : f32 to vector<1x128xf32>
    %59 = arith.addf %56, %58 : vector<1x128xf32>
    %cst_32 = arith.constant 0.000000e+00 : f32
    %60 = vector.broadcast %cst_32 : f32 to vector<1x128xf32>
    %61 = arith.maximumf %59, %60 : vector<1x128xf32>
    %c0_33 = arith.constant 0 : index
    %c0_34 = arith.constant 0 : index
    %62 = memref.load %arg5[%c0_33, %c0_34] : memref<2x1xf32, #tpu.memory_space<smem>>
    %63 = vector.broadcast %62 : f32 to vector<1x128xf32>
    %64 = arith.mulf %49, %63 : vector<1x128xf32>
    %c1_35 = arith.constant 1 : index
    %c0_36 = arith.constant 0 : index
    %65 = memref.load %arg5[%c1_35, %c0_36] : memref<2x1xf32, #tpu.memory_space<smem>>
    %66 = vector.broadcast %65 : f32 to vector<1x128xf32>
    %67 = arith.mulf %61, %66 : vector<1x128xf32>
    %68 = arith.addf %64, %67 : vector<1x128xf32>
    %c0_37 = arith.constant 0 : index
    %69 = memref.load %arg6[%c0_37] : memref<1xf32, #tpu.memory_space<smem>>
    %70 = vector.broadcast %69 : f32 to vector<1x128xf32>
    %71 = arith.addf %68, %70 : vector<1x128xf32>
    %c0_38 = arith.constant 0 : index
    %c0_39 = arith.constant 0 : index
    %72 = vector.load %arg8[%c0_38, %c0_39] : memref<1x128xf32, #tpu.memory_space<vmem>>, vector<1x128xf32>
    tpu.vector_store %arg8[%c0_38, %c0_39], %71 {strides = array<i32>} : memref<1x128xf32, #tpu.memory_space<vmem>>, vector<1x128xf32>,
    return
  }
  func.func @transform_0(%arg0: i32) -> (i32, i32) {
    %c0_i32 = arith.constant 0 : i32
    %c0_i32_0 = arith.constant 0 : i32
    %c0_i32_1 = arith.constant 0 : i32
    return %c0_i32, %c0_i32_0 : i32, i32
  }
  func.func @transform_1(%arg0: i32) -> i32 {
    %c0_i32 = arith.constant 0 : i32
    %c0_i32_0 = arith.constant 0 : i32
    return %c0_i32 : i32
  }
  func.func @transform_2(%arg0: i32) -> (i32, i32) {
    %c0_i32 = arith.constant 0 : i32
    %c0_i32_0 = arith.constant 0 : i32
    %c0_i32_1 = arith.constant 0 : i32
    return %c0_i32, %c0_i32_0 : i32, i32
  }
  func.func @transform_3(%arg0: i32) -> i32 {
    %c0_i32 = arith.constant 0 : i32
    %c0_i32_0 = arith.constant 0 : i32
    return %c0_i32 : i32
  }
  func.func @transform_4(%arg0: i32) -> (i32, i32) {
    %c0_i32 = arith.constant 0 : i32
    %c0_i32_0 = arith.constant 0 : i32
    %c0_i32_1 = arith.constant 0 : i32
    return %c0_i32, %c0_i32_0 : i32, i32
  }
  func.func @transform_5(%arg0: i32) -> i32 {
    %c0_i32 = arith.constant 0 : i32
    %c0_i32_0 = arith.constant 0 : i32
    return %c0_i32 : i32
  }
  func.func @transform_6(%arg0: i32) -> (i32, i32, i32) {
    %c0_i32 = arith.constant 0 : i32
    %c0_i32_0 = arith.constant 0 : i32
    %c0_i32_1 = arith.constant 0 : i32
    return %c0_i32, %arg0, %c0_i32_0 : i32, i32, i32
  }
  func.func @transform_7(%arg0: i32) -> (i32, i32) {
    %c0_i32 = arith.constant 0 : i32
    %c0_i32_0 = arith.constant 0 : i32
    return %arg0, %c0_i32 : i32, i32
  }
}

</mosaic_0001>

<bundles_post_ra>
// kernel: tpu_custom_call.1
= control target key start
LH: loop header
LB: loop body
LE: loop exit
PB: predicated region body
PF: predicated region fallthrough
CT: control target
= control target key end

     0   :  { %13 = vsyncpa [#allocation5], 0  ;;  %s361_s0 = inlined_call_operand.vmem [shape: f32[3,2], index: 0, kind: input, shape index: {}]   ;;  %s362_s1 = inlined_call_operand.vmem [shape: f32[2], index: 1, kind: input, shape index: {}]   ;;  %s363_s2 = inlined_call_operand.vmem [shape: f32[2,2], index: 2, kind: input, shape index: {}]   ;;  %s364_s3 = inlined_call_operand.vmem [shape: f32[2], index: 3, kind: input, shape index: {}]   ;;  %s365_s4 = inlined_call_operand.vmem [shape: f32[2,1], index: 4, kind: input, shape index: {}]   ;;  %s366_s5 = inlined_call_operand.<no memory space> [shape: f32[1], index: 5, kind: input, shape index: {}]   ;;  %s367_s6 = inlined_call_operand.vmem [shape: f32[3,1,128], index: 6, kind: input, shape index: {}]   ;;  %s368_s7 = inlined_call_operand.hbm [shape: f32[1,128], index: 7, kind: output, shape index: {}]  }
   0x1   :  { %14 = vsyncpa [#allocation7], 0 }
   0x2   :  { %15 = vsyncpa [#allocation10], 0  ;;  %s31_s26 = sshll.u32 %s362_s1, 4  ;;  %s32_s26 = int_to_ptr.vmem [resolvable:$true] %s31_s26 }
   0x3   :  { %16 = vsyncpa [#allocation4], 0  ;;  %s49_s29 = sshll.u32 %s364_s3, 4  ;;  %s285_s30 = smov [#allocation6]   ;;  %s50_s29 = int_to_ptr.vmem [resolvable:$true] %s49_s29 }
   0x4   :  { %34 = dma.vmem_to_smem %s32_s26, 16, %s285_s30, [#allocation7]  }
   0x5   :  { %s286_s8 = smov [#allocation9]   ;;  %s22_s11 = sshll.u32 %s361_s0, 4  ;;  %s23_s11 = int_to_ptr.vmem [resolvable:$true] %s22_s11 }
   0x6   :  { %52 = dma.vmem_to_smem %s50_s29, 16, %s286_s8, [#allocation10]  }
   0x7   :  { %s40_s1 = sshll.u32 %s363_s2, 4  ;;  %s287_s14 = smov [#allocation3]   ;;  %s41_s1 = int_to_ptr.vmem [resolvable:$true] %s40_s1 }
   0x8   :  { %25 = dma.vmem_to_smem %s23_s11, 64, %s287_s14, [#allocation5]  }
   0x9   :  { %s288_s15 = smov [#allocation8]   ;;  %s58_s17 = sshll.u32 %s365_s4, 4  ;;  %s59_s17 = int_to_ptr.vmem [resolvable:$true] %s58_s17 }
   0xa   :  { %43 = dma.vmem_to_smem %s41_s1, 32, %s288_s15, [#allocation7]  }
   0xb   :  { %s289_s18 = smov [#allocation11]  }
   0xc   :  { %61 = dma.vmem_to_smem %s59_s17, 32, %s289_s18, [#allocation10]  }
   0xd   :  { %277 = dma.done.wait [#allocation5], 64  }
   0xe   :  { %278 = vsyncadd [#allocation5], 4294967232 }
   0xf   :  { %279 = dma.done.wait [#allocation7], 48  }
  0x10   :  { %280 = vsyncadd [#allocation7], 4294967248 }
  0x11   :  { %281 = dma.done.wait [#allocation10], 48  }
  0x12   :  { %282 = vsyncadd [#allocation10], 4294967248 }
  0x13   :  { %86 = sfence }
  0x14   :  { %s92_s0 = sld [smem:[#allocation3]]  ;;  %v87_v0 = vld [vmem:[%s367_s6] sm:$0x1]  ;;  %v174_v1 = vld [vmem:[%s367_s6 + $0x1] sm:$0x1]  ;;  %v152_v45 = vstv %s366_s5  ;;  %s290_s15 = smov [#allocation12]  }
  0x15   :  { %s176_s2 = sld [smem:[#allocation3 + $0x80]]  ;;  %v175_v2 = vld [vmem:[%s367_s6 + $0x2] sm:$0x1]  ;;  %s160_s3 = sshll.u32 %s290_s15, 4  ;;  %s161_s3 = int_to_ptr.vmem [resolvable:$true] %s160_s3 }
  0x16   :  { %s177_s19 = sld [smem:[#allocation3 + $0x100]]  ;;  %s162_s18 = sshll.u32 %s368_s7, 4  ;;  %s163_s18 = int_to_ptr.hbm [resolvable:$true] %s162_s18 }
  0x17   :  { %s103_s20 = sld [smem:[#allocation6]] }
  0x18   :  { %s178_s23 = sld [smem:[#allocation3 + $0x1]] }
  0x19   :  { %s179_s25 = sld [smem:[#allocation3 + $0x81]] }
  0x1a   :  { %v93_v3 = vstv %s92_s0  ;;  %s180_s28 = sld [smem:[#allocation3 + $0x101]] }
  0x1b   :  { %v94_v4 = vmul.f32 %v93_v3, %v87_v0  ;;  %v96_v5 = vstv %s176_s2  ;;  %s181_s29 = sld [smem:[#allocation6 + $0x1]] }
  0x1c   :  { %v97_v6 = vmul.f32 %v174_v1, %v96_v5  ;;  %v100_v7 = vstv %s177_s19  ;;  %s122_s30 = sld [smem:[#allocation8]] }
  0x1d   :  { %v101_v8 = vmul.f32 %v175_v2, %v100_v7  ;;  %s182_s8 = sld [smem:[#allocation8 + $0x80]]  ;;  %v104_v11 = vstv %s103_s20 }
  0x1e   :  { %v98_v9 = vadd.f32 %v97_v6, %v94_v4  ;;  %v108_v10 = vstv %s178_s23  ;;  %s183_s9 = sld [smem:[#allocation8 + $0x1]] }
  0x1f   :  { %v109_v12 = vmul.f32 %v108_v10, %v87_v0  ;;  %v111_v13 = vstv %s179_s25  ;;  %s184_s6 = sld [smem:[#allocation8 + $0x81]] }
  0x20   :  { %v102_v14 = vadd.f32 %v101_v8, %v98_v9  ;;  %v112_v15 = vmul.f32 %v174_v1, %v111_v13  ;;  %v115_v16 = vstv %s180_s28  ;;  %s129_s10 = sld [smem:[#allocation9]] }
  0x21   :  { %v116_v17 = vmul.f32 %v175_v2, %v115_v16  ;;  %v119_v20 = vstv %s181_s29  ;;  %s185_s11 = sld [smem:[#allocation9 + $0x1]] }
  0x22   :  { %v105_v18 = vadd.f32 %v104_v11, %v102_v14  ;;  %v113_v19 = vadd.f32 %v112_v15, %v109_v12  ;;  %v123_v23 = vstv %s122_s30  ;;  %s144_s12 = sld [smem:[#allocation11]] }
  0x23   :  { %v126_v26 = vstv %s182_s8  ;;  %s186_s13 = sld [smem:[#allocation11 + $0x80]] }
  0x24   :  { %v106_v21 = vmax.f32 %v105_v18, 0.0  ;;  %v117_v22 = vadd.f32 %v116_v17, %v113_v19  ;;  %v134_v24 = vstv %s183_s9 }
  0x25   :  { %v137_v27 = vstv %s184_s6 }
  0x26   :  { %v120_v25 = vadd.f32 %v119_v20, %v117_v22  ;;  %v124_v29 = vmul.f32 %v123_v23, %v106_v21  ;;  %v135_v30 = vmul.f32 %v134_v24, %v106_v21  ;;  %v130_v33 = vstv %s129_s10 }
  0x27   :  { %v141_v34 = vstv %s185_s11 }
  0x28   :  { %v121_v28 = vmax.f32 %v120_v25, 0.0  ;;  %v145_v39 = vstv %s144_s12 }
  0x29   :  { %v148_v40 = vstv %s186_s13 }
  0x2a   :  { %v127_v31 = vmul.f32 %v126_v26, %v121_v28  ;;  %v138_v32 = vmul.f32 %v137_v27, %v121_v28 }
  0x2c   :  { %v128_v35 = vadd.f32 %v127_v31, %v124_v29  ;;  %v139_v36 = vadd.f32 %v138_v32, %v135_v30 }
  0x2e   :  { %v131_v37 = vadd.f32 %v130_v33, %v128_v35  ;;  %v142_v38 = vadd.f32 %v141_v34, %v139_v36 }
  0x30   :  { %v132_v41 = vmax.f32 %v131_v37, 0.0  ;;  %v143_v42 = vmax.f32 %v142_v38, 0.0 }
  0x32   :  { %v146_v43 = vmul.f32 %v145_v39, %v132_v41  ;;  %v149_v44 = vmul.f32 %v148_v40, %v143_v42 }
  0x34   :  { %v150_v46 = vadd.f32 %v149_v44, %v146_v43 }
  0x36   :  { %v153_v47 = vadd.f32 %v152_v45, %v150_v46 }
  0x38   :  { %154 = vst [vmem:[#allocation12] sm:$0x1] %v153_v47 }
  0x39   :  { %165 = dma.vmem_to_hbm [thread:$0]  %s161_s3, 16, %s163_s18, [#allocation4]  }
  0x3a   :  { %283 = dma.done.wait [#allocation4], 16  }
  0x3b   :  { %284 = vsyncadd [#allocation4], 4294967280 }
  0x3c   :  { %170 = vsyncpa [#allocation4], 1 }
  0x3d   :  { %171 = vsyncpa [#allocation5], 1 }
  0x3e   :  { %172 = vsyncpa [#allocation7], 1 }
  0x3f   :  { %173 = vsyncpa [#allocation10], 1 }

</bundles_post_ra>
